<compile_context>
chip_gen: v5e
topology: v5e:2x2
jax: 0.10.0
libtpu: 0.0.40
codegen_flags: <defaults>
</compile_context>

<pallas_src>
import functools

import jax
import jax.numpy as jnp
from jax.experimental import pallas as pl
from jax.experimental.pallas import tpu as pltpu

NEG_SLOPE = 0.01          # nn.LeakyReLU default
HIDDEN_1, HIDDEN_2 = 120, 80
H_PAD = 128               # lane-dense padded width for hidden / class dims


def _round_up(n, m):
    return ((n + m - 1) // m) * m


def _leaky_relu(x):
    return jnp.where(x > 0, x, NEG_SLOPE * x)


def class_predictor_kernel(x_ref, w_ref, b_ref, o_ref, *, compute_dtype, sub_m):
    """One batch tile: 3 matmuls + 2 leaky-relus, parameters resident in VMEM."""
    tm, in_dim = x_ref.shape
    num_classes = o_ref.shape[-1]
    in_pad = w_ref.shape[0] - 2 * H_PAD
    cd = compute_dtype

    # Parameters: constant index_map -> fetched once, VMEM-resident.  If the slab is
    # packed in `cd` (recommended) the astype is a no-op.
    w1 = w_ref[0:in_dim, :].astype(cd)                            # (in_dim, 128)
    w2 = w_ref[in_pad:in_pad + H_PAD, :].astype(cd)               # (128, 128)
    w3 = w_ref[in_pad + H_PAD:in_pad + 2 * H_PAD, :].astype(cd)   # (128, 128)
    b = b_ref[...]                                                # (8, 128) f32
    b1, b2, b3 = b[0:1, :], b[1:2, :], b[2:3, :]

    # Walk the tile in sub_m-row sub-tiles (static python loop, static slices): keeps
    # the (rows, 128) f32 intermediates' live ranges bounded at large tm while the
    # HBM<->VMEM DMA tile stays big.
    for r0 in range(0, tm, sub_m):
        rows = min(sub_m, tm - r0)
        x = x_ref[r0:r0 + rows, :].astype(cd)
        a1 = jnp.dot(x, w1, preferred_element_type=jnp.float32) + b1
        h1 = _leaky_relu(a1)                                      # f32 epilogue (v5e-safe)
        a2 = jnp.dot(h1.astype(cd), w2, preferred_element_type=jnp.float32) + b2
        h2 = _leaky_relu(a2)
        y = jnp.dot(h2.astype(cd), w3, preferred_element_type=jnp.float32) + b3
        # Only the real class columns are written back -> narrow HBM writeback.
        o_ref[r0:r0 + rows, :] = y[:, :num_classes].astype(o_ref.dtype)


@functools.partial(jax.jit,
                   static_argnames=("num_classes", "compute_dtype", "block_m", "sub_m"))
def class_predictor(x, w_slab, b_slab, *, num_classes,
                    compute_dtype=jnp.float32, block_m=1024, sub_m=256):
    """Fused forward pass.  x: (B, input_size); returns (B, num_classes) float32."""
    B, in_dim = x.shape
    in_pad = w_slab.shape[0] - 2 * H_PAD
    assert in_dim <= in_pad, "w_slab was packed for a smaller input size"

    sub_m = _round_up(max(sub_m, 8), 8)
    block_m = _round_up(max(block_m, 8), 8)
    # Batch tile: large enough to amortize per-step overhead / issue big DMAs, but
    # capped so the grid has >=4 steps when the batch allows it (keeps both v7x
    # TensorCores busy); never below 8 rows (sublane granularity).
    tm = max(8, min(block_m, _round_up(pl.cdiv(B, 4), 8)))
    grid_m = pl.cdiv(B, tm)  # ragged last block is clipped by Pallas

    flops = 2 * B * (in_dim * H_PAD + 2 * H_PAD * H_PAD)
    bytes_accessed = int(B * in_dim * x.dtype.itemsize
                         + w_slab.size * w_slab.dtype.itemsize
                         + b_slab.size * b_slab.dtype.itemsize
                         + B * num_classes * 4)

    kernel = functools.partial(class_predictor_kernel,
                               compute_dtype=compute_dtype, sub_m=sub_m)
    return pl.pallas_call(
        kernel,
        out_shape=jax.ShapeDtypeStruct((B, num_classes), jnp.float32),
        grid=(grid_m,),
        in_specs=[
            pl.BlockSpec((tm, in_dim), lambda i: (i, 0)),      # batch-tiled activations
            pl.BlockSpec(w_slab.shape, lambda i: (0, 0)),      # resident weight slab
            pl.BlockSpec(b_slab.shape, lambda i: (0, 0)),      # resident bias slab (f32)
        ],
        out_specs=pl.BlockSpec((tm, num_classes), lambda i: (i, 0)),  # narrow writeback
        compiler_params=pltpu.CompilerParams(
            dimension_semantics=("parallel",)),                # megacore split on v7x
        cost_estimate=pl.CostEstimate(flops=flops, transcendentals=0,
                                      bytes_accessed=bytes_accessed),
    )(x, w_slab, b_slab)


def pack_params(w1, b1, w2, b2, w3, b3, dtype=jnp.float32):
    """Zero-pad every layer to 128 lanes and pack into one weight slab + one bias slab.

    Weights are (in_features, out_features) (transposed vs PyTorch); biases (1, out).
    The weight slab is stored in `dtype` (use the kernel compute_dtype, e.g. bf16 on
    v6e/v7x, to avoid per-step conversion and halve parameter DMA).  Biases stay f32
    (f32 epilogue).  Padded rows/cols are zero so padded lanes stay inert
    (leaky_relu(0) == 0).
    """
    in_dim = w1.shape[0]
    assert max(w1.shape[1], w2.shape[1], w3.shape[1]) <= H_PAD
    in_pad = _round_up(in_dim, 8)

    def pad_w(w, rows, cols):
        w = jnp.asarray(w, jnp.float32)
        return jnp.pad(w, ((0, rows - w.shape[0]), (0, cols - w.shape[1]))).astype(dtype)

    def pad_b(b):
        b = jnp.asarray(b, jnp.float32).reshape(1, -1)
        return jnp.pad(b, ((0, 0), (0, H_PAD - b.shape[1])))

    w_slab = jnp.concatenate([pad_w(w1, in_pad, H_PAD),
                              pad_w(w2, H_PAD, H_PAD),
                              pad_w(w3, H_PAD, H_PAD)], axis=0)
    b_slab = jnp.concatenate([pad_b(b1), pad_b(b2), pad_b(b3),
                              jnp.zeros((5, H_PAD), jnp.float32)], axis=0)
    return w_slab, b_slab


def orthogonal_init(key, out_dim, in_dim):
    """Deterministic orthogonal init (QR of a random normal), like nn.init.orthogonal_."""
    n = max(out_dim, in_dim)
    a = jax.random.normal(key, (n, n), jnp.float32)
    q, r = jnp.linalg.qr(a)
    q = q * jnp.sign(jnp.diag(r))  # sign fix for uniqueness
    return q[:out_dim, :in_dim]


def make_params(key, input_size, num_classes):
    hidden_1, hidden_2 = HIDDEN_1, HIDDEN_2
    k = jax.random.split(key, 6)
    # PyTorch Linear stores weight as (out, in); kernel wants (in, out) -> transpose.
    w1 = orthogonal_init(k[0], hidden_1, input_size).T
    w2 = orthogonal_init(k[1], hidden_2, hidden_1).T
    w3 = orthogonal_init(k[2], num_classes, hidden_2).T
    # Biases: uniform(-1/sqrt(fan_in), 1/sqrt(fan_in)), kept 2-D (1, out).
    b1 = jax.random.uniform(k[3], (1, hidden_1), jnp.float32,
                            -1.0 / input_size ** 0.5, 1.0 / input_size ** 0.5)
    b2 = jax.random.uniform(k[4], (1, hidden_2), jnp.float32,
                            -1.0 / hidden_1 ** 0.5, 1.0 / hidden_1 ** 0.5)
    b3 = jax.random.uniform(k[5], (1, num_classes), jnp.float32,
                            -1.0 / hidden_2 ** 0.5, 1.0 / hidden_2 ** 0.5)
    return w1, b1, w2, b2, w3, b3


def reference_forward(x, w1, b1, w2, b2, w3, b3):
    h1 = _leaky_relu(x @ w1 + b1)
    h2 = _leaky_relu(h1 @ w2 + b2)
    return h2 @ w3 + b3


if __name__ == "__main__":
    key = jax.random.PRNGKey(0)
    k_x, k_x2, k_p = jax.random.split(key, 3)

    input_size, num_classes = 32, 10
    params = make_params(k_p, input_size, num_classes)
    w_slab, b_slab = pack_params(*params)

    # 1) Small batch, exact f32 path (PyTorch semantics).
    x = jax.random.normal(k_x, (8, input_size), jnp.float32)
    y = jax.block_until_ready(
        class_predictor(x, w_slab, b_slab, num_classes=num_classes))
    y_ref = reference_forward(x, *params)
    assert y.shape == (8, num_classes)
    assert jnp.allclose(y, y_ref, atol=1e-5, rtol=1e-5)

    # 2) Ragged batch (not divisible by the tile): multi-step grid + multi-sub-tile body.
    xb = jax.random.normal(k_x2, (300, input_size), jnp.float32)
    yb = jax.block_until_ready(
        class_predictor(xb, w_slab, b_slab, num_classes=num_classes,
                        block_m=128, sub_m=64))
    assert yb.shape == (300, num_classes)
    assert jnp.allclose(yb, reference_forward(xb, *params), atol=1e-4, rtol=1e-4)

    # 3) bf16 MXU operands (v6e/v7x fast path): bf16 weight slab, f32 accumulate/epilogue.
    w_slab_bf16, b_slab_f32 = pack_params(*params, dtype=jnp.bfloat16)
    yh = jax.block_until_ready(
        class_predictor(x, w_slab_bf16, b_slab_f32, num_classes=num_classes,
                        compute_dtype=jnp.bfloat16))
    assert yh.shape == (8, num_classes)
    assert bool(jnp.all(jnp.isfinite(yh)))

    print("KERNEL_OK")
</pallas_src>

<mosaic_0001>
module attributes {stable_mosaic.version = 11 : i64} {
  func.func @class_predictor_kernel(%arg0: i32, %arg1: memref<8x32xf32, #tpu.memory_space<vmem>>, %arg2: memref<288x128xf32, #tpu.memory_space<vmem>>, %arg3: memref<8x128xf32, #tpu.memory_space<vmem>>, %arg4: memref<8x10xf32, #tpu.memory_space<vmem>>) attributes {dimension_semantics = [#tpu.dimension_semantics<parallel>], iteration_bounds = array<i64: 1>, scalar_prefetch = 0 : i64, scratch_operands = 0 : i64, tpu.core_type = #tpu.core_type<tc>, window_params = [{transform_indices = @transform_0, window_bounds = array<i64: 8, 32>}, {pipeline_mode = #tpu.pipeline_mode<synchronous>, transform_indices = @transform_1, window_bounds = array<i64: 288, 128>}, {pipeline_mode = #tpu.pipeline_mode<synchronous>, transform_indices = @transform_2, window_bounds = array<i64: 8, 128>}, {transform_indices = @transform_3, window_bounds = array<i64: 8, 10>}]} {
    %c0 = arith.constant 0 : index
    %c0_0 = arith.constant 0 : index
    %0 = vector.load %arg2[%c0, %c0_0] : memref<288x128xf32, #tpu.memory_space<vmem>>, vector<32x128xf32>
    %c32 = arith.constant 32 : index
    %c0_1 = arith.constant 0 : index
    %1 = vector.load %arg2[%c32, %c0_1] : memref<288x128xf32, #tpu.memory_space<vmem>>, vector<128x128xf32>
    %c160 = arith.constant 160 : index
    %c0_2 = arith.constant 0 : index
    %2 = vector.load %arg2[%c160, %c0_2] : memref<288x128xf32, #tpu.memory_space<vmem>>, vector<128x128xf32>
    %c0_3 = arith.constant 0 : index
    %c0_4 = arith.constant 0 : index
    %3 = vector.load %arg3[%c0_3, %c0_4] : memref<8x128xf32, #tpu.memory_space<vmem>>, vector<8x128xf32>
    %4 = vector.extract_strided_slice %3 {offsets = [0, 0], sizes = [1, 128], strides = [1, 1]} : vector<8x128xf32> to vector<1x128xf32>
    %5 = vector.extract_strided_slice %3 {offsets = [1, 0], sizes = [1, 128], strides = [1, 1]} : vector<8x128xf32> to vector<1x128xf32>
    %6 = vector.extract_strided_slice %3 {offsets = [2, 0], sizes = [1, 128], strides = [1, 1]} : vector<8x128xf32> to vector<1x128xf32>
    %c0_5 = arith.constant 0 : index
    %c0_6 = arith.constant 0 : index
    %7 = vector.load %arg1[%c0_5, %c0_6] : memref<8x32xf32, #tpu.memory_space<vmem>>, vector<8x32xf32>
    %cst = arith.constant dense<0.000000e+00> : vector<8x128xf32>
    %8 = tpu.matmul %7, %0, %cst {dimension_numbers = #tpu.dot_dimension_numbers<[1], [0], [0], [1], [0, 0, 1, 1], [], []>} : vector<8x32xf32>, vector<32x128xf32>, vector<8x128xf32> -> vector<8x128xf32>
    %9 = vector.broadcast %4 : vector<1x128xf32> to vector<8x128xf32>
    %10 = arith.addf %8, %9 : vector<8x128xf32>
    %cst_7 = arith.constant 0.000000e+00 : f32
    %11 = vector.broadcast %cst_7 : f32 to vector<8x128xf32>
    %12 = arith.cmpf ogt, %10, %11 : vector<8x128xf32>
    %cst_8 = arith.constant 0.00999999977 : f32
    %13 = vector.broadcast %cst_8 : f32 to vector<8x128xf32>
    %14 = arith.mulf %13, %10 : vector<8x128xf32>
    %15 = arith.select %12, %10, %14 : vector<8x128xi1>, vector<8x128xf32>
    %cst_9 = arith.constant dense<0.000000e+00> : vector<8x128xf32>
    %16 = tpu.matmul %15, %1, %cst_9 {dimension_numbers = #tpu.dot_dimension_numbers<[1], [0], [0], [1], [0, 0, 1, 1], [], []>} : vector<8x128xf32>, vector<128x128xf32>, vector<8x128xf32> -> vector<8x128xf32>
    %17 = vector.broadcast %5 : vector<1x128xf32> to vector<8x128xf32>
    %18 = arith.addf %16, %17 : vector<8x128xf32>
    %cst_10 = arith.constant 0.000000e+00 : f32
    %19 = vector.broadcast %cst_10 : f32 to vector<8x128xf32>
    %20 = arith.cmpf ogt, %18, %19 : vector<8x128xf32>
    %cst_11 = arith.constant 0.00999999977 : f32
    %21 = vector.broadcast %cst_11 : f32 to vector<8x128xf32>
    %22 = arith.mulf %21, %18 : vector<8x128xf32>
    %23 = arith.select %20, %18, %22 : vector<8x128xi1>, vector<8x128xf32>
    %cst_12 = arith.constant dense<0.000000e+00> : vector<8x128xf32>
    %24 = tpu.matmul %23, %2, %cst_12 {dimension_numbers = #tpu.dot_dimension_numbers<[1], [0], [0], [1], [0, 0, 1, 1], [], []>} : vector<8x128xf32>, vector<128x128xf32>, vector<8x128xf32> -> vector<8x128xf32>
    %25 = vector.broadcast %6 : vector<1x128xf32> to vector<8x128xf32>
    %26 = arith.addf %24, %25 : vector<8x128xf32>
    %27 = vector.extract_strided_slice %26 {offsets = [0, 0], sizes = [8, 10], strides = [1, 1]} : vector<8x128xf32> to vector<8x10xf32>
    %c0_13 = arith.constant 0 : index
    %c0_14 = arith.constant 0 : index
    %28 = vector.load %arg4[%c0_13, %c0_14] : memref<8x10xf32, #tpu.memory_space<vmem>>, vector<8x10xf32>
    tpu.vector_store %arg4[%c0_13, %c0_14], %27 {strides = array<i32>} : memref<8x10xf32, #tpu.memory_space<vmem>>, vector<8x10xf32>,
    return
  }
  func.func @transform_0(%arg0: i32) -> (i32, i32) {
    %c0_i32 = arith.constant 0 : i32
    %c0_i32_0 = arith.constant 0 : i32
    return %arg0, %c0_i32 : i32, i32
  }
  func.func @transform_1(%arg0: i32) -> (i32, i32) {
    %c0_i32 = arith.constant 0 : i32
    %c0_i32_0 = arith.constant 0 : i32
    %c0_i32_1 = arith.constant 0 : i32
    return %c0_i32, %c0_i32_0 : i32, i32
  }
  func.func @transform_2(%arg0: i32) -> (i32, i32) {
    %c0_i32 = arith.constant 0 : i32
    %c0_i32_0 = arith.constant 0 : i32
    %c0_i32_1 = arith.constant 0 : i32
    return %c0_i32, %c0_i32_0 : i32, i32
  }
  func.func @transform_3(%arg0: i32) -> (i32, i32) {
    %c0_i32 = arith.constant 0 : i32
    %c0_i32_0 = arith.constant 0 : i32
    return %arg0, %c0_i32 : i32, i32
  }
}

</mosaic_0001>

<bundles_post_ra>
// kernel: class_predictor.1
= control target key start
LH: loop header
LB: loop body
LE: loop exit
PB: predicated region body
PF: predicated region fallthrough
CT: control target
= control target key end

     0   :  { %8 = vsyncpa [#allocation3], 0  ;;  %s336_s0 = inlined_call_operand.hbm [shape: f32[8,32], index: 0, kind: input, shape index: {}]   ;;  %s337_s1 = inlined_call_operand.hbm [shape: f32[288,128], index: 1, kind: input, shape index: {}]   ;;  %s338_s2 = inlined_call_operand.hbm [shape: f32[8,128], index: 2, kind: input, shape index: {}]   ;;  %s339_s3 = inlined_call_operand.hbm [shape: f32[8,10], index: 3, kind: output, shape index: {}]  }
   0x1   :  { %9 = vsyncpa [#allocation6], 0  ;;  %s26_s14 = sshll.u32 %s337_s1, 4  ;;  %s27_s14 = int_to_ptr.hbm [resolvable:$true] %s26_s14 }
   0x2   :  { %10 = vsyncpa [#allocation4], 0  ;;  %s298_s15 = smov [#allocation5]   ;;  %s16_s19 = sshll.u32 %s336_s0, 4  ;;  %s17_s19 = int_to_ptr.hbm [resolvable:$true] %s16_s19 }
   0x3   :  { %s28_s16 = sshll.u32 %s298_s15, 4  ;;  %s299_s20 = smov 128   ;;  %s29_s16 = int_to_ptr.vmem [resolvable:$true] %s28_s16 }
   0x4   :  { %s300_s21 = smov 8   ;;  %s301_s22 = smov [#allocation2]  }
   0x5   :  { %34 = dma.hbm_to_vmem [thread:$0]  %s27_s14, 4608, %s29_s16, [#allocation6], %s299_s20, %s299_s20, %s300_s21  }
   0x6   :  { %s18_s23 = sshll.u32 %s301_s22, 4  ;;  %s40_s26 = sshll.u32 %s338_s2, 4  ;;  %s19_s23 = int_to_ptr.vmem [resolvable:$true] %s18_s23  ;;  %s41_s26 = int_to_ptr.hbm [resolvable:$true] %s40_s26 }
   0x7   :  { %21 = dma.hbm_to_vmem [thread:$0]  %s17_s19, 128, %s19_s23, [#allocation3]  }
   0x8   :  { %s302_s1 = smov [#allocation7]  }
   0x9   :  { %s42_s27 = sshll.u32 %s302_s1, 4  ;;  %s43_s27 = int_to_ptr.vmem [resolvable:$true] %s42_s27 }
   0xa   :  { %45 = dma.hbm_to_vmem [thread:$0]  %s41_s26, 128, %s43_s27, [#allocation6]  }
   0xb   :  { %292 = dma.done.wait [#allocation3], 128  }
   0xc   :  { %293 = vsyncadd [#allocation3], 4294967168 }
   0xd   :  { %294 = dma.done.wait [#allocation6], 4736  }
   0xe   :  { %295 = vsyncadd [#allocation6], 4294962560  ;;  %v61_v0 = vld [vmem:[#allocation5 + $0x18] sm:$0xff]  ;;  %v60_v1 = vld [vmem:[#allocation5 + $0x10] sm:$0xff]  ;;  %vm97_vm0 = vcmask 261120   ;;  %s303_s0 = smov [#allocation8]  }
   0xf   :  { %113 = vmatpush.msra.mxu0 %v61_v0  ;;  %v77_v2 = vld [vmem:[#allocation5 + $0x98] sm:$0xff]  ;;  %v59_v3 = vld [vmem:[#allocation5 + $0x8] sm:$0xff]  ;;  %v76_v4 = vld [vmem:[#allocation5 + $0x90] sm:$0xff]  ;;  %s176_s2 = sshll.u32 %s303_s0, 4  ;;  %s178_s30 = sshll.u32 %s339_s3, 4  ;;  %vm169_vm3 = vcmask 80896   ;;  %s177_s2 = int_to_ptr.vmem [resolvable:$true] %s176_s2  ;;  %s179_s30 = int_to_ptr.hbm [resolvable:$true] %s178_s30 }
  0x10   :  { %125 = vmatpush.msra.mxu1 %v77_v2  ;;  %v75_v5 = vld [vmem:[#allocation5 + $0x88] sm:$0xff]  ;;  %v58_v6 = vld [vmem:[#allocation5] sm:$0xff]  ;;  %v95_v7 = vld [vmem:[#allocation2] sm:$0xff] }
  0x11   :  { %114 = vmatpush.msra.mxu0 %v60_v1  ;;  %v74_v8 = vld [vmem:[#allocation5 + $0x80] sm:$0xff]  ;;  %v73_v9 = vld [vmem:[#allocation5 + $0x78] sm:$0xff]  ;;  %v72_v10 = vld [vmem:[#allocation5 + $0x70] sm:$0xff] }
  0x12   :  { %126 = vmatpush.msra.mxu1 %v76_v4  ;;  %v71_v11 = vld [vmem:[#allocation5 + $0x68] sm:$0xff]  ;;  %v70_v12 = vld [vmem:[#allocation5 + $0x60] sm:$0xff]  ;;  %v69_v13 = vld [vmem:[#allocation5 + $0x58] sm:$0xff] }
  0x13   :  { %115 = vmatpush.msra.mxu0 %v59_v3  ;;  %v68_v14 = vld [vmem:[#allocation5 + $0x50] sm:$0xff]  ;;  %v67_v15 = vld [vmem:[#allocation5 + $0x48] sm:$0xff]  ;;  %v66_v16 = vld [vmem:[#allocation5 + $0x40] sm:$0xff] }
  0x14   :  { %127 = vmatpush.msra.mxu1 %v75_v5  ;;  %v65_v17 = vld [vmem:[#allocation5 + $0x38] sm:$0xff]  ;;  %v64_v18 = vld [vmem:[#allocation5 + $0x30] sm:$0xff]  ;;  %v63_v19 = vld [vmem:[#allocation5 + $0x28] sm:$0xff] }
  0x15   :  { %116 = vmatpush.msra.mxu0 %v58_v6  ;;  %v62_v20 = vld [vmem:[#allocation5 + $0x20] sm:$0xff]  ;;  %v93_v21 = vld [vmem:[#allocation5 + $0x118] sm:$0xff]  ;;  %v92_v22 = vld [vmem:[#allocation5 + $0x110] sm:$0xff] }
  0x16   :  { %189 = vmatmul.msk.f32.vlgmr.msra.gmra.mxu0 %vm97_vm0, %v95_v7  ;;  %128 = vmatpush.msra.mxu1 %v74_v8  ;;  %v91_v23 = vld [vmem:[#allocation5 + $0x108] sm:$0xff]  ;;  %v90_v24 = vld [vmem:[#allocation5 + $0x100] sm:$0xff]  ;;  %v89_v25 = vld [vmem:[#allocation5 + $0xf8] sm:$0xff] }
  0x17   :  { %149 = vmatpush.msra.mxu2 %v93_v21  ;;  %v88_v26 = vld [vmem:[#allocation5 + $0xf0] sm:$0xff]  ;;  %v87_v27 = vld [vmem:[#allocation5 + $0xe8] sm:$0xff]  ;;  %v86_v28 = vld [vmem:[#allocation5 + $0xe0] sm:$0xff] }
  0x18   :  { %129 = vmatpush.msra.mxu1 %v73_v9  ;;  %v85_v29 = vld [vmem:[#allocation5 + $0xd8] sm:$0xff]  ;;  %v84_v30 = vld [vmem:[#allocation5 + $0xd0] sm:$0xff]  ;;  %v83_v31 = vld [vmem:[#allocation5 + $0xc8] sm:$0xff] }
  0x19   :  { %150 = vmatpush.msra.mxu2 %v92_v22  ;;  %v94_v32 = vld [vmem:[#allocation7] sm:$0xff]  ;;  %v81_v34 = vld [vmem:[#allocation5 + $0xb8] sm:$0xff]  ;;  %v80_v40 = vld [vmem:[#allocation5 + $0xb0] sm:$0xff] }
  0x1a   :  { %130 = vmatpush.msra.mxu1 %v72_v10  ;;  %v82_v33 = vld [vmem:[#allocation5 + $0xc0] sm:$0xff]  ;;  %v96_v35 = vperm.slane %v94_v32, 0  ;;  %v79_v41 = vld [vmem:[#allocation5 + $0xa8] sm:$0xff]  ;;  %v124_v43 = vperm.slane %v94_v32, 1  ;;  %v148_v48 = vperm.slane %v94_v32, 2 }
  0x1b   :  { %151 = vmatpush.msra.mxu2 %v91_v23  ;;  %v78_v42 = vld [vmem:[#allocation5 + $0xa0] sm:$0xff] }
  0x1c   :  { %131 = vmatpush.msra.mxu1 %v71_v11 }
  0x1d   :  { %152 = vmatpush.msra.mxu2 %v90_v24 }
  0x1e   :  { %132 = vmatpush.msra.mxu1 %v70_v12 }
  0x1f   :  { %153 = vmatpush.msra.mxu2 %v89_v25 }
  0x20   :  { %133 = vmatpush.msra.mxu1 %v69_v13 }
  0x21   :  { %154 = vmatpush.msra.mxu2 %v88_v26 }
  0x22   :  { %134 = vmatpush.msra.mxu1 %v68_v14 }
  0x23   :  { %155 = vmatpush.msra.mxu2 %v87_v27 }
  0x24   :  { %135 = vmatpush.msra.mxu1 %v67_v15 }
  0x25   :  { %156 = vmatpush.msra.mxu2 %v86_v28 }
  0x26   :  { %136 = vmatpush.msra.mxu1 %v66_v16 }
  0x27   :  { %157 = vmatpush.msra.mxu2 %v85_v29 }
  0x28   :  { %137 = vmatpush.msra.mxu1 %v65_v17 }
  0x29   :  { %158 = vmatpush.msra.mxu2 %v84_v30 }
  0x2a   :  { %138 = vmatpush.msra.mxu1 %v64_v18 }
  0x2b   :  { %159 = vmatpush.msra.mxu2 %v83_v31 }
  0x2c   :  { %139 = vmatpush.msra.mxu1 %v63_v19 }
  0x2d   :  { %160 = vmatpush.msra.mxu2 %v82_v33 }
  0x2e   :  { %140 = vmatpush.msra.mxu1 %v62_v20 }
  0x2f   :  { %161 = vmatpush.msra.mxu2 %v81_v34 }
  0x31   :  { %162 = vmatpush.msra.mxu2 %v80_v40 }
  0x33   :  { %163 = vmatpush.msra.mxu2 %v79_v41 }
  0x35   :  { %164 = vmatpush.msra.mxu2 %v78_v42 }
  0x93   :  { %v118_v36 = vpop.f32.mrf.mxu0 }
  0x94   :  { %v119_v37 = vadd.f32 %v118_v36, %v96_v35 }
  0x96   :  { %vm121_vm1 = vcmp.gt.f32.partialorder %v119_v37, 0.0  ;;  %v122_v38 = vmul.f32 0.01, %v119_v37 }
  0x98   :  { %v123_v39 = vsel %vm121_vm1, %v119_v37, %v122_v38 }
  0x99   :  { %141 = vmatmul.f32.vlgmr.msra.gmra.mxu1 %v123_v39 }
 0x116   :  { %v142_v44 = vpop.f32.mrf.mxu1 }
 0x117   :  { %v143_v45 = vadd.f32 %v142_v44, %v124_v43 }
 0x119   :  { %vm145_vm2 = vcmp.gt.f32.partialorder %v143_v45, 0.0  ;;  %v146_v46 = vmul.f32 0.01, %v143_v45 }
 0x11b   :  { %v147_v47 = vsel %vm145_vm2, %v143_v45, %v146_v46 }
 0x11c   :  { %165 = vmatmul.f32.vlgmr.msra.gmra.mxu2 %v147_v47 }
 0x19f   :  { %v166_v49 = vpop.f32.mrf.mxu2 }
 0x1a0   :  { %v167_v50 = vadd.f32 %v166_v49, %v148_v48 }
 0x1a2   :  { %170 = vst.msk [vmem:[#allocation8] sm:$0xff] %vm169_vm3, %v167_v50 }
 0x1a3   :  { %181 = dma.vmem_to_hbm [thread:$0]  %s177_s2, 128, %s179_s30, [#allocation4]  }
 0x1a4   :  { %296 = dma.done.wait [#allocation4], 128  }
 0x1a5   :  { %297 = vsyncadd [#allocation4], 4294967168 }
 0x1a6   :  { %186 = vsyncpa [#allocation3], 1 }
 0x1a7   :  { %187 = vsyncpa [#allocation6], 1 }
 0x1a8   :  { %188 = vsyncpa [#allocation4], 1 }

</bundles_post_ra>
